<compile_context>
chip_gen: v7x
topology: tpu7x:2x2x1
jax: 0.10.0
libtpu: 0.0.40
codegen_flags: <defaults>
</compile_context>

<pallas_src>
import jax
import jax.numpy as jnp
from jax.experimental import pallas as pl
from jax.experimental.pallas import tpu as pltpu

_LANES = 128


def _round_up(x, m):
    return (x + m - 1) // m * m


def _mdn_fused_kernel(x_ref, w_ref, b_ref, mean_ref, scale_ref, acc_ref):
    # Grid = (batch_tiles, k_tiles); K is the reduction axis (last, "arbitrary").
    # x_ref:    (TB, tk)      input dtype (cast to compute dtype in-kernel)
    # w_ref:    (tk, 2*Fp)    bf16  -- cols [0:Fp]=mean head, [Fp:2Fp]=std head
    # b_ref:    (1, 2*Fp)     f32
    # mean_ref: (TB, Fp)      out_dtype
    # scale_ref:(TB, Fp)      out_dtype (= exp(std_logits))
    # acc_ref:  (TB, 2*Fp)    f32 accumulator scratch
    k = pl.program_id(1)

    @pl.when(k == 0)
    def _init():
        acc_ref[...] = jnp.zeros_like(acc_ref)

    x = x_ref[...].astype(w_ref.dtype)  # in-kernel cast: VPU filler under MXU/DMA
    acc_ref[...] += jnp.dot(x, w_ref[...], preferred_element_type=jnp.float32)

    @pl.when(k == pl.num_programs(1) - 1)
    def _finalize():
        fp = mean_ref.shape[-1]  # multiple of 128 -> vreg-aligned column split
        y = acc_ref[...] + b_ref[...]
        mean_ref[...] = y[:, :fp].astype(mean_ref.dtype)
        scale_ref[...] = jnp.exp(y[:, fp:]).astype(scale_ref.dtype)


def prepare_mdn_params(w_mean, b_mean, w_std, b_std, *, compute_dtype=jnp.bfloat16):
    """One-time param prep: transpose, fuse the two heads, pad to lane width, cast.

    Args (PyTorch nn.Linear layout):
      w_mean, w_std: (F, in_dim),  b_mean, b_std: (F,)   with F = K*D
    Returns:
      w_fused: (in_dim, 2*F_pad) compute_dtype
      b_fused: (1, 2*F_pad)      float32
      f:       original F
      f_pad:   F rounded up to a multiple of 128
    """
    f, in_dim = w_mean.shape
    assert w_std.shape == (f, in_dim)
    f_pad = max(_LANES, _round_up(f, _LANES))
    pad = f_pad - f

    wm = jnp.asarray(w_mean).T.astype(compute_dtype)  # (in_dim, F)
    ws = jnp.asarray(w_std).T.astype(compute_dtype)
    if pad:
        zcols = jnp.zeros((in_dim, pad), compute_dtype)
        wm = jnp.concatenate([wm, zcols], axis=1)
        ws = jnp.concatenate([ws, zcols], axis=1)
    w_fused = jnp.concatenate([wm, ws], axis=1)  # (in_dim, 2*F_pad)

    bm = jnp.asarray(b_mean).astype(jnp.float32)
    bs = jnp.asarray(b_std).astype(jnp.float32)
    if pad:
        zb = jnp.zeros((pad,), jnp.float32)
        bm = jnp.concatenate([bm, zb])
        bs = jnp.concatenate([bs, zb])
    b_fused = jnp.concatenate([bm, bs]).reshape(1, 2 * f_pad)
    return w_fused, b_fused, f, f_pad


def _vmem_budget_and_limit():
    """Generation-aware VMEM budget (~60% of physical) and explicit scoped limit."""
    physical = 64 << 20  # conservative fallback (v7x per-TC VMEM)
    try:
        info = pltpu.get_tpu_info()
        physical = int(getattr(info, "vmem_capacity_bytes", physical))
    except Exception:
        pass
    budget = max(int(physical * 0.6), 16 << 20)           # tiling budget
    limit = min(int(physical * 0.9), budget + (8 << 20))  # compiler scoped limit
    return budget, limit


def _choose_k_tile(in_dim, f_pad, budget):
    """Stream the fused weight along K only when keeping it fully resident
    (double-buffered) would eat more than ~half of the VMEM budget."""
    resident_bytes = 2 * in_dim * 2 * f_pad * 2  # double-buffered bf16 weight
    if resident_bytes <= budget // 2 or in_dim % _LANES != 0:
        return in_dim
    for t in (1024, 512, 256, 128):
        if t < in_dim and in_dim % t == 0:
            return t
    return in_dim


def _choose_batch_tile(B, k_tile, f_pad, budget, *, x_bytes, out_bytes):
    """Largest batch tile that fits the VMEM budget, with a minimum step count."""
    # Double-buffered weight tile + bias (constant across batch tiles).
    fixed = 2 * (k_tile * 2 * f_pad * 2 + 2 * f_pad * 4)
    per_row = (2 * k_tile * x_bytes            # x tile, double-buffered
               + 2 * 2 * f_pad * out_bytes     # two output tiles, double-buffered
               + 2 * f_pad * 4)                # f32 accumulator scratch
    avail = max(budget - fixed, 1 << 20)
    cap = max(8, (avail // per_row) // 8 * 8)
    cap = min(cap, 1024)  # per-step overhead fully amortized by 512-1024 rows
    # Prefer >= 4 batch grid steps when B allows: >= 2 steps per TensorCore on
    # v7x (megacore sharding of the "parallel" axis) and >= 3 steps on v5e/v6e
    # so prefetch of i+1 and writeback of i-1 both overlap compute of i.
    if B >= 4 * 8:
        cap = min(cap, max(8, (B // 4) // 8 * 8))
    return max(8, min(cap, B))


def mixture_diag_normal_forward(x, w_fused, b_fused, n_components, out_dim, *,
                                out_dtype=jnp.bfloat16, batch_tile=None,
                                force_pallas=False):
    """Runs the fused MDN head.

    Args:
      x:        (..., in_dim)      (any float dtype; cast to bf16 in-kernel)
      w_fused:  (in_dim, 2*F_pad)  from prepare_mdn_params (bf16)
      b_fused:  (1, 2*F_pad)       from prepare_mdn_params (f32)
    Returns:
      mean:  (..., n_components, out_dim)  out_dtype
      scale: (..., n_components, out_dim)  out_dtype  (= exp(std_logits))
    """
    lead = x.shape[:-1]
    in_dim = x.shape[-1]
    F = n_components * out_dim
    two_fp = w_fused.shape[1]
    f_pad = two_fp // 2
    assert w_fused.shape == (in_dim, 2 * f_pad)
    assert b_fused.shape == (1, 2 * f_pad)
    assert F <= f_pad

    B = 1
    for d in lead:
        B *= int(d)
    B = max(B, 1)
    x2 = x.reshape(B, in_dim)  # free row-major collapse; NO dtype cast here
    out_itemsize = jnp.dtype(out_dtype).itemsize
    b_rows = B

    if not force_pallas and 2 * B * f_pad * out_itemsize < (256 << 10):
        # Tiny problem: pallas_call fixed cost dominates; let XLA fuse it.
        y = (jnp.dot(x2.astype(w_fused.dtype), w_fused,
                     preferred_element_type=jnp.float32) + b_fused)
        mean2 = y[:, :f_pad].astype(out_dtype)
        scale2 = jnp.exp(y[:, f_pad:]).astype(out_dtype)
    else:
        budget, vmem_limit = _vmem_budget_and_limit()
        k_tile = _choose_k_tile(in_dim, f_pad, budget)
        if batch_tile is None:
            batch_tile = _choose_batch_tile(
                B, k_tile, f_pad, budget,
                x_bytes=jnp.dtype(x2.dtype).itemsize, out_bytes=out_itemsize)
        batch_tile = min(int(batch_tile), B)
        if batch_tile < B:
            batch_tile = max(8, batch_tile // 8 * 8)
            b_rows = _round_up(B, batch_tile)   # pad instead of requiring B % tile == 0
        else:
            batch_tile = B
            b_rows = B
        if b_rows > B:
            x2 = jnp.concatenate(
                [x2, jnp.zeros((b_rows - B, in_dim), x2.dtype)], axis=0)

        grid = (b_rows // batch_tile, in_dim // k_tile)

        mean2, scale2 = pl.pallas_call(
            _mdn_fused_kernel,
            out_shape=(
                jax.ShapeDtypeStruct((b_rows, f_pad), out_dtype),
                jax.ShapeDtypeStruct((b_rows, f_pad), out_dtype),
            ),
            grid_spec=pltpu.PrefetchScalarGridSpec(
                num_scalar_prefetch=0,
                grid=grid,
                in_specs=[
                    pl.BlockSpec((batch_tile, k_tile), lambda i, k: (i, k)),   # x
                    pl.BlockSpec((k_tile, 2 * f_pad), lambda i, k: (k, 0)),    # W fused
                    pl.BlockSpec((1, 2 * f_pad), lambda i, k: (0, 0)),         # b fused
                ],
                out_specs=[
                    pl.BlockSpec((batch_tile, f_pad), lambda i, k: (i, 0)),    # mean
                    pl.BlockSpec((batch_tile, f_pad), lambda i, k: (i, 0)),    # scale
                ],
                scratch_shapes=[pltpu.VMEM((batch_tile, 2 * f_pad), jnp.float32)],
            ),
            compiler_params=pltpu.CompilerParams(
                dimension_semantics=("parallel", "arbitrary"),
                vmem_limit_bytes=int(vmem_limit)),
        )(x2, w_fused, b_fused)

    # Crop only when actually needed; when F % 128 == 0 and no batch padding was
    # added this is a pure (free) reshape with no extra HBM pass.
    if b_rows != B:
        mean2 = mean2[:B]
        scale2 = scale2[:B]
    if f_pad != F:
        # NOTE: padded columns (>= F) hold bias-only mean and exp(0)=1 scale;
        # they are dropped here and must never be reduced over downstream.
        mean2 = mean2[:, :F]
        scale2 = scale2[:, :F]
    mean = mean2.reshape(*lead, n_components, out_dim)
    scale = scale2.reshape(*lead, n_components, out_dim)
    return mean, scale


def _init_linear_params(key, in_dim, out_features):
    # Deterministic init mimicking PyTorch nn.Linear default (uniform +-1/sqrt(in_dim)).
    kw, kb = jax.random.split(key)
    bound = 1.0 / jnp.sqrt(in_dim)
    w = jax.random.uniform(kw, (out_features, in_dim), jnp.float32, -bound, bound)
    b = jax.random.uniform(kb, (out_features,), jnp.float32, -bound, bound)
    return w, b


if __name__ == "__main__":
    in_dim = 32
    out_dim = 16
    n_components = 8   # K*D = 128 -> lane-exact, post-kernel crop is a free reshape
    batch = 8

    key = jax.random.PRNGKey(0)
    kx, km, ks = jax.random.split(key, 3)

    x = jax.random.normal(kx, (batch, in_dim), jnp.float32)
    w_mean, b_mean = _init_linear_params(km, in_dim, out_dim * n_components)
    w_std, b_std = _init_linear_params(ks, in_dim, out_dim * n_components)

    # One-time parameter preparation (transpose + fuse + lane-pad + bf16 cast),
    # hoisted out of the forward path.
    w_fused, b_fused, _, _ = prepare_mdn_params(w_mean, b_mean, w_std, b_std)

    # Default fast path: bf16 outputs (kernel is HBM-writeback bound).
    mean, scale = mixture_diag_normal_forward(
        x, w_fused, b_fused, n_components, out_dim, force_pallas=True)
    jax.block_until_ready((mean, scale))

    # f32-output run for a tight numerical check against a matched-precision ref.
    mean32, scale32 = mixture_diag_normal_forward(
        x, w_fused, b_fused, n_components, out_dim,
        out_dtype=jnp.float32, force_pallas=True)
    jax.block_until_ready((mean32, scale32))

    # Reference with matched matmul precision (bf16 operands, f32 accumulation).
    xc = x.astype(jnp.bfloat16)
    mean_ref = (jnp.dot(xc, w_mean.T.astype(jnp.bfloat16),
                        preferred_element_type=jnp.float32)
                + b_mean).reshape(batch, n_components, out_dim)
    scale_ref = jnp.exp(jnp.dot(xc, w_std.T.astype(jnp.bfloat16),
                                preferred_element_type=jnp.float32)
                        + b_std).reshape(batch, n_components, out_dim)

    assert mean.shape == (batch, n_components, out_dim)
    assert scale.shape == (batch, n_components, out_dim)
    assert mean.dtype == jnp.bfloat16 and scale.dtype == jnp.bfloat16
    assert jnp.allclose(mean32, mean_ref, atol=1e-4, rtol=1e-4)
    assert jnp.allclose(scale32, scale_ref, atol=1e-4, rtol=1e-4)

    # Loose sanity check of the bf16-output path against full-f32
    # PyTorch-equivalent math (bf16 operands/outputs add sub-percent error).
    mean_f32 = (x @ w_mean.T + b_mean).reshape(batch, n_components, out_dim)
    scale_f32 = jnp.exp(x @ w_std.T + b_std).reshape(batch, n_components, out_dim)
    assert jnp.allclose(mean.astype(jnp.float32), mean_f32, atol=5e-2, rtol=5e-2)
    assert jnp.allclose(scale.astype(jnp.float32), scale_f32, atol=5e-2, rtol=5e-2)

    print("KERNEL_OK")
</pallas_src>

<mosaic_0001>
module attributes {stable_mosaic.version = 11 : i64} {
  func.func @_mdn_fused_kernel(%arg0: i32, %arg1: i32, %arg2: memref<8x32xf32, #tpu.memory_space<vmem>>, %arg3: memref<32x256xbf16, #tpu.memory_space<vmem>>, %arg4: memref<1x256xf32, #tpu.memory_space<vmem>>, %arg5: memref<8x128xbf16, #tpu.memory_space<vmem>>, %arg6: memref<8x128xbf16, #tpu.memory_space<vmem>>, %arg7: memref<8x256xf32, #tpu.memory_space<vmem>>) attributes {dimension_semantics = [#tpu.dimension_semantics<parallel>, #tpu.dimension_semantics<arbitrary>], iteration_bounds = array<i64: 1, 1>, scalar_prefetch = 0 : i64, scratch_operands = 1 : i64, tpu.core_type = #tpu.core_type<tc>, window_params = [{transform_indices = @transform_0, window_bounds = array<i64: 8, 32>}, {transform_indices = @transform_1, window_bounds = array<i64: 32, 256>}, {pipeline_mode = #tpu.pipeline_mode<synchronous>, transform_indices = @transform_2, window_bounds = array<i64: 1, 256>}, {transform_indices = @transform_3, window_bounds = array<i64: 8, 128>}, {transform_indices = @transform_4, window_bounds = array<i64: 8, 128>}]} {
    %c0_i32 = arith.constant 0 : i32
    %0 = arith.cmpi eq, %arg1, %c0_i32 : i32
    %1 = arith.extui %0 : i1 to i32
    %c0_i32_0 = arith.constant 0 : i32
    %2 = arith.cmpi ne, %1, %c0_i32_0 : i32
    scf.if %2 {
      %cst_10 = arith.constant 0.000000e+00 : f32
      %13 = vector.broadcast %cst_10 : f32 to vector<8x256xf32>
      %c0_11 = arith.constant 0 : index
      %c0_12 = arith.constant 0 : index
      %14 = vector.load %arg7[%c0_11, %c0_12] : memref<8x256xf32, #tpu.memory_space<vmem>>, vector<8x256xf32>
      tpu.vector_store %arg7[%c0_11, %c0_12], %13 {strides = array<i32>} : memref<8x256xf32, #tpu.memory_space<vmem>>, vector<8x256xf32>,
    } else {
    }
    %c0 = arith.constant 0 : index
    %c0_1 = arith.constant 0 : index
    %3 = vector.load %arg2[%c0, %c0_1] : memref<8x32xf32, #tpu.memory_space<vmem>>, vector<8x32xf32>
    %4 = arith.truncf %3 : vector<8x32xf32> to vector<8x32xbf16>
    %c0_2 = arith.constant 0 : index
    %c0_3 = arith.constant 0 : index
    %5 = vector.load %arg7[%c0_2, %c0_3] : memref<8x256xf32, #tpu.memory_space<vmem>>, vector<8x256xf32>
    %c0_4 = arith.constant 0 : index
    %c0_5 = arith.constant 0 : index
    %6 = vector.load %arg3[%c0_4, %c0_5] : memref<32x256xbf16, #tpu.memory_space<vmem>>, vector<32x256xbf16>
    %cst = arith.constant dense<0.000000e+00> : vector<8x256xf32>
    %7 = tpu.matmul %4, %6, %cst {dimension_numbers = #tpu.dot_dimension_numbers<[1], [0], [0], [1], [0, 0, 1, 1], [], []>} : vector<8x32xbf16>, vector<32x256xbf16>, vector<8x256xf32> -> vector<8x256xf32>
    %8 = arith.addf %5, %7 : vector<8x256xf32>
    %c0_6 = arith.constant 0 : index
    %c0_7 = arith.constant 0 : index
    %9 = vector.load %arg7[%c0_6, %c0_7] : memref<8x256xf32, #tpu.memory_space<vmem>>, vector<8x256xf32>
    tpu.vector_store %arg7[%c0_6, %c0_7], %8 {strides = array<i32>} : memref<8x256xf32, #tpu.memory_space<vmem>>, vector<8x256xf32>,
    %c0_i32_8 = arith.constant 0 : i32
    %10 = arith.cmpi eq, %arg1, %c0_i32_8 : i32
    %11 = arith.extui %10 : i1 to i32
    %c0_i32_9 = arith.constant 0 : i32
    %12 = arith.cmpi ne, %11, %c0_i32_9 : i32
    scf.if %12 {
      %c0_10 = arith.constant 0 : index
      %c0_11 = arith.constant 0 : index
      %13 = vector.load %arg7[%c0_10, %c0_11] : memref<8x256xf32, #tpu.memory_space<vmem>>, vector<8x256xf32>
      %c0_12 = arith.constant 0 : index
      %c0_13 = arith.constant 0 : index
      %14 = vector.load %arg4[%c0_12, %c0_13] : memref<1x256xf32, #tpu.memory_space<vmem>>, vector<1x256xf32>
      %15 = vector.broadcast %14 : vector<1x256xf32> to vector<8x256xf32>
      %16 = arith.addf %13, %15 : vector<8x256xf32>
      %17 = vector.extract_strided_slice %16 {offsets = [0, 0], sizes = [8, 128], strides = [1, 1]} : vector<8x256xf32> to vector<8x128xf32>
      %18 = arith.truncf %17 : vector<8x128xf32> to vector<8x128xbf16>
      %c0_14 = arith.constant 0 : index
      %c0_15 = arith.constant 0 : index
      %19 = vector.load %arg5[%c0_14, %c0_15] : memref<8x128xbf16, #tpu.memory_space<vmem>>, vector<8x128xbf16>
      tpu.vector_store %arg5[%c0_14, %c0_15], %18 {strides = array<i32>} : memref<8x128xbf16, #tpu.memory_space<vmem>>, vector<8x128xbf16>,
      %20 = vector.extract_strided_slice %16 {offsets = [0, 128], sizes = [8, 128], strides = [1, 1]} : vector<8x256xf32> to vector<8x128xf32>
      %21 = math.exp %20 : vector<8x128xf32>
      %22 = arith.truncf %21 : vector<8x128xf32> to vector<8x128xbf16>
      %c0_16 = arith.constant 0 : index
      %c0_17 = arith.constant 0 : index
      %23 = vector.load %arg6[%c0_16, %c0_17] : memref<8x128xbf16, #tpu.memory_space<vmem>>, vector<8x128xbf16>
      tpu.vector_store %arg6[%c0_16, %c0_17], %22 {strides = array<i32>} : memref<8x128xbf16, #tpu.memory_space<vmem>>, vector<8x128xbf16>,
    } else {
    }
    return
  }
  func.func @transform_0(%arg0: i32, %arg1: i32) -> (i32, i32) {
    %c0_i32 = arith.constant 0 : i32
    return %arg0, %arg1 : i32, i32
  }
  func.func @transform_1(%arg0: i32, %arg1: i32) -> (i32, i32) {
    %c0_i32 = arith.constant 0 : i32
    %c0_i32_0 = arith.constant 0 : i32
    return %arg1, %c0_i32 : i32, i32
  }
  func.func @transform_2(%arg0: i32, %arg1: i32) -> (i32, i32) {
    %c0_i32 = arith.constant 0 : i32
    %c0_i32_0 = arith.constant 0 : i32
    %c0_i32_1 = arith.constant 0 : i32
    return %c0_i32, %c0_i32_0 : i32, i32
  }
  func.func @transform_3(%arg0: i32, %arg1: i32) -> (i32, i32) {
    %c0_i32 = arith.constant 0 : i32
    %c0_i32_0 = arith.constant 0 : i32
    return %arg0, %c0_i32 : i32, i32
  }
  func.func @transform_4(%arg0: i32, %arg1: i32) -> (i32, i32) {
    %c0_i32 = arith.constant 0 : i32
    %c0_i32_0 = arith.constant 0 : i32
    return %arg0, %c0_i32 : i32, i32
  }
}

</mosaic_0001>

<bundles_post_ra>
// kernel: tpu_custom_call.1
= control target key start
LH: loop header
LB: loop body
LE: loop exit
PB: predicated region body
PF: predicated region fallthrough
CT: control target
= control target key end

     0   :  { %10 = vsyncpa [#allocation4], 0  ;;  %s389_s0 = inlined_call_operand.hbm [shape: f32[8,32], index: 0, kind: input, shape index: {}]   ;;  %s390_s1 = inlined_call_operand.hbm [shape: bf16[32,256], index: 1, kind: input, shape index: {}]   ;;  %s391_s2 = inlined_call_operand.vmem [shape: f32[1,256], index: 2, kind: input, shape index: {}]   ;;  %s392_s3 = inlined_call_operand.hbm [shape: bf16[8,128], index: 3, kind: output, shape index: {0}]   ;;  %s393_s4 = inlined_call_operand.hbm [shape: bf16[8,128], index: 4, kind: output, shape index: {1}]  }
   0x1   :  { %11 = vsyncpa [#allocation7], 0 }
   0x2   :  { %12 = vsyncpa [#allocation5], 0 }
   0x3   :  { %13 = vsyncpa [#allocation10], 0  ;;  %s299_s15 = smov [#allocation3]   ;;  %s300_s17 = smov [#allocation6]  }
   0x4   :  { %s20_s16 = sshll.u32 %s299_s15, 4  ;;  %s29_s18 = sshll.u32 %s300_s17, 4  ;;  %s21_s16 = int_to_ptr.vmem [resolvable:$true] %s20_s16  ;;  %s331_s18 = int_to_ptr.vmem [resolvable:$true] %s29_s18 }
   0x5   :  { %s203_s21 = scalar_lea.hbm %s389_s0, 128 }
   0x6   :  { %p204_p0 = scmp.ne.s32.totalorder %s389_s0, %s203_s21  ;;  %p207_p1 = scmp.lt.u32.totalorder %s203_s21, %s389_s0 }
   0x8   :  { %p209_p2 = pnand %p207_p1, %p204_p0 }
   0xa   :  { %212 = shalt.err (!%p209_p2)
}
   0xb   :  { %s213_s26 = scalar_lea.vmem %s21_s16, 128  ;;  %p218_p4 = scmp.lt.s32.totalorder %s21_s16, %s21_s16 }
   0xc   :  { %p214_p3 = scmp.ne.s32.totalorder %s21_s16, %s213_s26  ;;  %p219_p5 = scmp.lt.s32.totalorder %s213_s26, %s213_s26 }
   0xe   :  { %p220_p6 = por %p219_p5, %p218_p4 }
  0x10   :  { %p221_p7 = pnand %p220_p6, %p214_p3 }
  0x12   :  { %224 = shalt.err (!%p221_p7)
}
  0x13   :  { %23 = dma.hbm_to_vmem [thread:$0]  %s389_s0, 128, %s21_s16, [#allocation4]  }
  0x14   :  { %s225_s5 = scalar_lea.hbm %s390_s1, 512 }
  0x15   :  { %p226_p8 = scmp.ne.s32.totalorder %s390_s1, %s225_s5  ;;  %p229_p9 = scmp.lt.u32.totalorder %s225_s5, %s390_s1 }
  0x17   :  { %p231_p10 = pnand %p229_p9, %p226_p8 }
  0x19   :  { %234 = shalt.err (!%p231_p10)
}
  0x1a   :  { %s235_s10 = scalar_lea.vmem %s331_s18, 512  ;;  %p240_p12 = scmp.lt.s32.totalorder %s331_s18, %s331_s18 }
  0x1b   :  { %p236_p11 = scmp.ne.s32.totalorder %s331_s18, %s235_s10  ;;  %p241_p13 = scmp.lt.s32.totalorder %s235_s10, %s235_s10 }
  0x1d   :  { %p242_p0 = por %p241_p13, %p240_p12 }
  0x1f   :  { %p243_p1 = pnand %p242_p0, %p236_p11 }
  0x21   :  { %246 = shalt.err (!%p243_p1)
}
  0x22   :  { %s301_s0 = smov 128   ;;  %s302_s11 = smov 8  }
  0x23   :  { %35 = dma.hbm_to_vmem [thread:$0]  %s390_s1, 512, %s331_s18, [#allocation7], %s301_s0, %s301_s0, %s302_s11  }
  0x24   :  { %291 = dma.done.wait [#allocation4], 128  }
  0x25   :  { %292 = vsyncadd [#allocation4], 4294967168 }
  0x26   :  { %293 = dma.done.wait [#allocation7], 512  }
  0x27   :  { %294 = vsyncadd [#allocation7], 4294966784  ;;  %v303_v0 = vmov 0   ;;  %v195_v1 = vld [vmem:[#allocation6 + $0x4] ss:$8 sps:$4 sm:$0xff]   ;;  %v51_v5 = vld [vmem:[#allocation3] sm:$0xff]  ;;  %v135_v7 = vlaneseq }
  0x28   :  { %115 = vmatprep.mubr.bf16.mxu0 %v303_v0  ;;  %v197_v2 = vld [vmem:[#allocation6] ss:$8 sps:$4 sm:$0xff]   ;;  %83 = vmatprep.subr.bf16.mxu0 %v195_v1  ;;  %v198_v3 = vld [vmem:[#allocation6 + $0x14] ss:$8 sps:$4 sm:$0xff]   ;;  %v200_v4 = vld [vmem:[#allocation6 + $0x10] ss:$8 sps:$4 sm:$0xff]   ;;  %v52_v6 = vpack.c.bf16 %v51_v5, %v51_v5 }
  0x29   :  { %84 = vmatpush1.bf16.msra.mxu0 %v197_v2  ;;  %vm79_vm0 = vcmask 261120   ;;  %v136_v8 = vshrl.u32 %v135_v7, 7  ;;  %v133_v10 = vld [vmem:[%s391_s2] sm:$0x3]  ;;  %s304_s15 = smov [#allocation8]  }
  0x2a   :  { %85 = vmatprep.subr.bf16.mxu0 %v198_v3  ;;  %s159_s16 = sshll.u32 %s304_s15, 4  ;;  %s160_s16 = int_to_ptr.vmem [resolvable:$true] %s159_s16 }
  0x2b   :  { %v137_v9 = vsub.s32 0, %v136_v8  ;;  %v141_v11 = vsub.s32 1, %v136_v8  ;;  %s247_s17 = scalar_lea.vmem %s160_s16, 64  ;;  %p252_p3 = scmp.lt.s32.totalorder %s160_s16, %s160_s16 }
  0x2c   :  { %p248_p2 = scmp.ne.s32.totalorder %s160_s16, %s247_s17  ;;  %p253_p4 = scmp.lt.s32.totalorder %s247_s17, %s247_s17 }
  0x2d   :  { %86 = vmatpush1.bf16.msra.mxu0 %v200_v4  ;;  %v138_v12 = vrot.slane %v133_v10, %v137_v9  ;;  %v142_v13 = vrot.slane %v133_v10, %v141_v11 }
  0x2e   :  { %p254_p5 = por %p253_p4, %p252_p3 }
  0x30   :  { %187 = vmatmul.mubr.msk.bf16.vlgmr.msra.gmra.mrb[0].mxu0 %vm79_vm0, %v52_v6  ;;  %p255_p6 = pnand %p254_p5, %p248_p2 }
 0x103   :  { %v117_v14 = vpop.f32.mrb[0].mxu0 }
 0x104   :  { %v145_v15 = vadd.f32 %v138_v12, %v117_v14  ;;  %v119_v16 = vpop.f32.mrb[1].mxu0 }
 0x105   :  { %v146_v17 = vadd.f32 %v142_v13, %v119_v16  ;;  %v121_v18 = vpop.f32.mrb[2].mxu0 }
 0x106   :  { %v147_v19 = vpack.c.bf16 %v145_v15, %v145_v15  ;;  %v122_v20 = vpop.f32.mrb[3].mxu0 }
 0x107   :  { %v149_v21 = vmul.f32 1.442695, %v146_v17 }
 0x108   :  { %148 = vst [vmem:[#allocation8] sm:$0xf] %v147_v19 }
 0x109   :  { %201 = vpow2.f32 %v149_v21 }
 0x10a   :  { %258 = shalt.err (!%p255_p6)
}
 0x10b   :  { %s259_s19 = scalar_lea.hbm %s392_s3, 64 }
 0x10c   :  { %p260_p7 = scmp.ne.s32.totalorder %s392_s3, %s259_s19  ;;  %p263_p8 = scmp.lt.u32.totalorder %s259_s19, %s392_s3 }
 0x10e   :  { %p265_p9 = pnand %p263_p8, %p260_p7 }
 0x110   :  { %268 = shalt.err (!%p265_p9)
}
 0x111   :  { %162 = dma.vmem_to_hbm [thread:$0]  %s160_s16, 64, %s392_s3, [#allocation5]  }
 0x112   :  { %s305_s26 = smov [#allocation9]  }
 0x113   :  { %s169_s27 = sshll.u32 %s305_s26, 4  ;;  %v202_v22 = vpop.eup %201  ;;  %s170_s27 = int_to_ptr.vmem [resolvable:$true] %s169_s27 }
 0x114   :  { %v151_v23 = vpack.c.bf16 %v202_v22, %v202_v22  ;;  %s269_s28 = scalar_lea.vmem %s170_s27, 64  ;;  %p274_p11 = scmp.lt.s32.totalorder %s170_s27, %s170_s27 }
 0x115   :  { %p270_p10 = scmp.ne.s32.totalorder %s170_s27, %s269_s28  ;;  %p275_p12 = scmp.lt.s32.totalorder %s269_s28, %s269_s28 }
 0x116   :  { %152 = vst [vmem:[#allocation9] sm:$0xf] %v151_v23 }
 0x117   :  { %p276_p13 = por %p275_p12, %p274_p11 }
 0x119   :  { %p277_p0 = pnand %p276_p13, %p270_p10 }
 0x11b   :  { %280 = shalt.err (!%p277_p0)
}
 0x11c   :  { %s281_s5 = scalar_lea.hbm %s393_s4, 64 }
 0x11d   :  { %p282_p1 = scmp.ne.s32.totalorder %s393_s4, %s281_s5  ;;  %p285_p2 = scmp.lt.u32.totalorder %s281_s5, %s393_s4 }
 0x11f   :  { %p287_p3 = pnand %p285_p2, %p282_p1 }
 0x121   :  { %290 = shalt.err (!%p287_p3)
}
 0x122   :  { %172 = dma.vmem_to_hbm [thread:$0]  %s170_s27, 64, %s393_s4, [#allocation10]  }
 0x123   :  { %295 = dma.done.wait [#allocation5], 64  }
 0x124   :  { %296 = vsyncadd [#allocation5], 4294967232 }
 0x125   :  { %297 = dma.done.wait [#allocation10], 64  }
 0x126   :  { %298 = vsyncadd [#allocation10], 4294967232 }
 0x127   :  { %179 = vsyncpa [#allocation4], 1 }
 0x128   :  { %180 = vsyncpa [#allocation7], 1 }
 0x129   :  { %181 = vsyncpa [#allocation5], 1 }
 0x12a   :  { %182 = vsyncpa [#allocation10], 1 }

</bundles_post_ra>
